<compile_context>
chip_gen: v5e
topology: v5e:2x2
jax: 0.10.0
libtpu: 0.0.40
codegen_flags: <defaults>
</compile_context>

<pallas_src>
import math

import jax
import jax.numpy as jnp
from jax.experimental import pallas as pl
from jax.experimental.pallas import tpu as pltpu

_LANE = 128


def _cdiv(a, b):
    return -(-a // b)


def _lifting_kernel(w_ref, b_ref, x_ref, o_ref):
    # w_ref: (Cout, Cin)     resident weight
    # b_ref: (Cout, 1)       resident bias (broadcasts over the lane/pixel axis)
    # x_ref: (Nb, Cin,  TL)  input tile  -- channels on sublanes, pixels on lanes
    # o_ref: (Nb, Cout, TL)  output tile -- lane-dense store
    w = w_ref[...]
    bias = b_ref[...]
    nb = x_ref.shape[0]

    def one_batch(b):
        acc = jnp.dot(w, x_ref[b], preferred_element_type=jnp.float32)
        o_ref[b] = (acc + bias).astype(o_ref.dtype)

    if nb <= 16:
        # Small batch block: static unroll (gives the LLO scheduler visibility).
        for b in range(nb):
            one_batch(b)
    else:
        # Large batch block: bounded code size via an in-kernel loop.
        def body(b, carry):
            one_batch(b)
            return carry
        jax.lax.fori_loop(0, nb, body, 0)


def _vmem_info():
    """Physical VMEM capacity and the budget we allow for streaming tiles."""
    try:
        cap = int(pltpu.get_tpu_info().vmem_capacity_bytes)
    except Exception:
        cap = 64 << 20  # conservative fallback (v7x per-TC physical)
    # Budget for the double-buffered streaming tiles (x + y blocks):
    #   ~24 MiB on v7x (64 MiB physical), ~48 MiB on v5e/v6e (128 MiB).
    budget = min(max(cap * 3 // 8, 8 << 20), 48 << 20)
    return budget, cap


def _pick_tiles(N, HW, Cin, Cout, itemsize, budget_bytes):
    """Pick (Nb, TL) so each grid step moves a large, lane-dense chunk while the
    double-buffered footprint 2*Nb*TL*(Cin+Cout)*itemsize stays under budget."""
    per_px = (Cin + Cout) * itemsize            # in + out bytes per (batch, pixel)
    # Bytes moved per grid step (x tile + y tile); double-buffering doubles it.
    step_budget = min(budget_bytes // 2, 8 << 20)
    max_px = max(step_budget // per_px, _LANE)  # cap on Nb * TL

    # Pixel tile: full extent when it fits (always legal), else a large
    # 128-lane multiple capped at 32768 lanes.
    if HW <= min(max_px, 32768):
        TL = HW
    else:
        TL = min(32768, max_px)
        TL = max((TL // _LANE) * _LANE, _LANE)

    # Batch blocking fills the rest of the per-step budget (amortizes the
    # ~0.35 us / ~600-cycle per-grid-step overhead on small-HW shapes).
    Nb = int(max(1, min(N, max_px // max(TL, 1))))

    # Megacore: keep >= 2 "parallel" grid steps so both v7x TensorCores run.
    if _cdiv(N, Nb) * _cdiv(HW, TL) < 2:
        if N >= 2:
            Nb = _cdiv(N, 2)                     # split batch into 2 blocks
        elif HW >= 2 * _LANE:
            TL = _cdiv(_cdiv(HW, 2), _LANE) * _LANE  # ~half of HW, 128-aligned
    return Nb, TL


def lifting_forward(x, weight, bias):
    """1x1 conv (pure channel mixing) via a Pallas matmul kernel.

    x      : (N, Cin, *spatial)
    weight : (Cout, Cin)   (kernel_size=1 squeezed)
    bias   : (Cout,)
    returns (N, Cout, *spatial), same dtype as x.
    """
    N, Cin = x.shape[0], x.shape[1]
    spatial = x.shape[2:]
    HW = int(math.prod(spatial)) if spatial else 1
    Cout = weight.shape[0]
    itemsize = jnp.dtype(x.dtype).itemsize

    # Free (contiguous) reshapes only — no NCHW<->NHWC HBM transposes.
    x_mat = x.reshape(N, Cin, HW)
    b_mat = bias.reshape(Cout, 1).astype(jnp.float32)

    budget, cap = _vmem_info()
    Nb, TL = _pick_tiles(N, HW, Cin, Cout, itemsize, budget)
    grid = (_cdiv(N, Nb), _cdiv(HW, TL))

    # Double-buffered VMEM footprint (streaming tiles + resident weight/bias).
    foot = 2 * Nb * TL * (Cin + Cout) * itemsize + 2 * (Cout * Cin + Cout) * 4
    vmem_limit = int(min(cap * 3 // 4, max(foot + (8 << 20), 32 << 20)))

    cost = pl.CostEstimate(
        flops=2 * N * HW * Cin * Cout,
        transcendentals=0,
        bytes_accessed=itemsize * (N * Cin * HW + N * Cout * HW)
        + 4 * (Cin * Cout + Cout),
    )

    y_mat = pl.pallas_call(
        _lifting_kernel,
        out_shape=jax.ShapeDtypeStruct((N, Cout, HW), x.dtype),
        grid_spec=pltpu.PrefetchScalarGridSpec(
            num_scalar_prefetch=0,
            grid=grid,
            in_specs=[
                # Weight & bias: constant block index -> stay resident in VMEM.
                pl.BlockSpec((Cout, Cin), lambda n, t: (0, 0)),
                pl.BlockSpec((Cout, 1), lambda n, t: (0, 0)),
                # Input: Nb batch elements, all channels, TL pixels.
                pl.BlockSpec((Nb, Cin, TL), lambda n, t: (n, 0, t)),
            ],
            out_specs=pl.BlockSpec((Nb, Cout, TL), lambda n, t: (n, 0, t)),
        ),
        compiler_params=pltpu.CompilerParams(
            dimension_semantics=("parallel", "parallel"),
            vmem_limit_bytes=vmem_limit,
        ),
        cost_estimate=cost,
    )(weight, b_mat, x_mat)

    # Free reshape back to channel-first layout.
    return y_mat.reshape((N, Cout) + spatial)


def init_lifting_params(key, in_channels, out_channels):
    """Deterministic init mirroring nn.Conv2d default (U(-1/sqrt(fan_in), +))."""
    kw, kb = jax.random.split(key)
    bound = 1.0 / (in_channels ** 0.5)  # kernel_size = 1 -> fan_in = Cin
    weight = jax.random.uniform(kw, (out_channels, in_channels),
                                minval=-bound, maxval=bound, dtype=jnp.float32)
    bias = jax.random.uniform(kb, (out_channels,),
                              minval=-bound, maxval=bound, dtype=jnp.float32)
    return weight, bias


if __name__ == "__main__":
    key = jax.random.PRNGKey(0)
    k_x, k_p = jax.random.split(key)

    N, Cin, H, W = 2, 4, 16, 16
    Cout = 32

    x = jax.random.normal(k_x, (N, Cin, H, W), dtype=jnp.float32)
    weight, bias = init_lifting_params(k_p, Cin, Cout)

    y = lifting_forward(x, weight, bias)
    y = jax.block_until_ready(y)

    # Reference check in plain JAX (channel mixing + bias).
    y_ref = jnp.einsum("oc,nchw->nohw", weight, x) + bias[None, :, None, None]
    assert y.shape == (N, Cout, H, W)
    assert jnp.allclose(y, y_ref, atol=1e-5, rtol=1e-5)

    # Exercise the tail-tile path (HW % TL != 0, non-multiple-of-128 pixels)
    # and the batch-blocked path with a second, odd-shaped input.
    x2 = jax.random.normal(k_x, (3, Cin, 10, 13), dtype=jnp.float32)
    y2 = jax.block_until_ready(lifting_forward(x2, weight, bias))
    y2_ref = jnp.einsum("oc,nchw->nohw", weight, x2) + bias[None, :, None, None]
    assert jnp.allclose(y2, y2_ref, atol=1e-5, rtol=1e-5)

    print("KERNEL_OK")
</pallas_src>

<mosaic_0001>
module attributes {stable_mosaic.version = 11 : i64} {
  func.func @_lifting_kernel(%arg0: i32, %arg1: i32, %arg2: memref<32x4xf32, #tpu.memory_space<vmem>>, %arg3: memref<32x1xf32, #tpu.memory_space<vmem>>, %arg4: memref<1x4x256xf32, #tpu.memory_space<vmem>>, %arg5: memref<1x32x256xf32, #tpu.memory_space<vmem>>) attributes {dimension_semantics = [#tpu.dimension_semantics<parallel>, #tpu.dimension_semantics<parallel>], iteration_bounds = array<i64: 2, 1>, scalar_prefetch = 0 : i64, scratch_operands = 0 : i64, tpu.core_type = #tpu.core_type<tc>, window_params = [{pipeline_mode = #tpu.pipeline_mode<synchronous>, transform_indices = @transform_0, window_bounds = array<i64: 32, 4>}, {pipeline_mode = #tpu.pipeline_mode<synchronous>, transform_indices = @transform_1, window_bounds = array<i64: 32, 1>}, {transform_indices = @transform_2, window_bounds = array<i64: 1, 4, 256>}, {transform_indices = @transform_3, window_bounds = array<i64: 1, 32, 256>}]} {
    %c0 = arith.constant 0 : index
    %c0_0 = arith.constant 0 : index
    %0 = vector.load %arg2[%c0, %c0_0] : memref<32x4xf32, #tpu.memory_space<vmem>>, vector<32x4xf32>
    %c0_1 = arith.constant 0 : index
    %c0_2 = arith.constant 0 : index
    %1 = vector.load %arg3[%c0_1, %c0_2] : memref<32x1xf32, #tpu.memory_space<vmem>>, vector<32x1xf32>
    %c0_3 = arith.constant 0 : index
    %c0_4 = arith.constant 0 : index
    %c0_5 = arith.constant 0 : index
    %2 = vector.load %arg4[%c0_3, %c0_4, %c0_5] : memref<1x4x256xf32, #tpu.memory_space<vmem>>, vector<1x4x256xf32>
    %3 = vector.shape_cast %2 : vector<1x4x256xf32> to vector<4x256xf32>
    %cst = arith.constant dense<0.000000e+00> : vector<32x256xf32>
    %4 = tpu.matmul %0, %3, %cst {dimension_numbers = #tpu.dot_dimension_numbers<[1], [0], [0], [1], [0, 0, 1, 1], [], []>} : vector<32x4xf32>, vector<4x256xf32>, vector<32x256xf32> -> vector<32x256xf32>
    %5 = vector.broadcast %1 : vector<32x1xf32> to vector<32x256xf32>
    %6 = arith.addf %4, %5 : vector<32x256xf32>
    %c0_6 = arith.constant 0 : index
    %c0_7 = arith.constant 0 : index
    %c0_8 = arith.constant 0 : index
    %7 = vector.load %arg5[%c0_6, %c0_7, %c0_8] : memref<1x32x256xf32, #tpu.memory_space<vmem>>, vector<1x32x256xf32>
    %8 = vector.shape_cast %7 : vector<1x32x256xf32> to vector<32x256xf32>
    %9 = vector.shape_cast %6 : vector<32x256xf32> to vector<1x32x256xf32>
    tpu.vector_store %arg5[%c0_6, %c0_7, %c0_8], %9 {strides = array<i32>} : memref<1x32x256xf32, #tpu.memory_space<vmem>>, vector<1x32x256xf32>,
    return
  }
  func.func @transform_0(%arg0: i32, %arg1: i32) -> (i32, i32) {
    %c0_i32 = arith.constant 0 : i32
    %c0_i32_0 = arith.constant 0 : i32
    %c0_i32_1 = arith.constant 0 : i32
    return %c0_i32, %c0_i32_0 : i32, i32
  }
  func.func @transform_1(%arg0: i32, %arg1: i32) -> (i32, i32) {
    %c0_i32 = arith.constant 0 : i32
    %c0_i32_0 = arith.constant 0 : i32
    %c0_i32_1 = arith.constant 0 : i32
    return %c0_i32, %c0_i32_0 : i32, i32
  }
  func.func @transform_2(%arg0: i32, %arg1: i32) -> (i32, i32, i32) {
    %c0_i32 = arith.constant 0 : i32
    %c0_i32_0 = arith.constant 0 : i32
    return %arg0, %c0_i32, %arg1 : i32, i32, i32
  }
  func.func @transform_3(%arg0: i32, %arg1: i32) -> (i32, i32, i32) {
    %c0_i32 = arith.constant 0 : i32
    %c0_i32_0 = arith.constant 0 : i32
    return %arg0, %c0_i32, %arg1 : i32, i32, i32
  }
}

</mosaic_0001>

<bundles_post_ra>
// kernel: tpu_custom_call.1
= control target key start
LH: loop header
LB: loop body
LE: loop exit
PB: predicated region body
PF: predicated region fallthrough
CT: control target
= control target key end

     0   :  { %8 = vsyncpa [#allocation3], 0  ;;  %s737_s0 = inlined_call_operand.vmem [shape: f32[32,4], index: 0, kind: input, shape index: {}]   ;;  %s738_s1 = inlined_call_operand.vmem [shape: f32[32,1], index: 1, kind: input, shape index: {}]   ;;  %s739_s2 = inlined_call_operand.vmem [shape: f32[2,4,256], index: 2, kind: input, shape index: {}]   ;;  %s740_s3 = inlined_call_operand.hbm [shape: f32[2,32,256], index: 3, kind: output, shape index: {}]  }
   0x1   :  { %10 = vsyncpa [#allocation3 + $0x1], 0  ;;  %s604_s12 = smov 0   ;;  %s606_s13 = smov 0  }
   0x2   :  { %s608_s14 = smov 0   ;;  %s610_s15 = smov 0  }
   0x3   :  { %s612_s16 = smov 0   ;;  %s614_s17 = smov 0  }
   0x4 LB: > { %s414_s18 = sadd.s32 4294967295, %s579_s17   ;;  %s415_s19 = sadd.s32 4294967294, %s579_s17   ;;  %s579_s17 = sphi %s614_s17, %s16_s17   ;;  %s575_s16 = sphi %s612_s16, %s747_s16   ;;  %s571_s15 = sphi %s610_s15, %s746_s15   ;;  %s567_s14 = sphi %s608_s14, %s745_s14   ;;  %s563_s13 = sphi %s606_s13, %s744_s13   ;;  %s559_s12 = sphi %s604_s12, %s743_s12  }
   0x5   : > { %s28_s20 = sadd.s32 1, %s575_s16  ;;  %s107_s21 = sadd.s32 1, %s567_s14 }
   0x6   : > { %p30_p0 = scmp.ge.s32.totalorder %s28_s20, 2  ;;  %p117_p1 = scmp.ne.s32.totalorder %s567_s14, %s563_s13 }
   0x7   : > { %p118_p2 = scmp.eq.s32.totalorder %s414_s18, 1  ;;  %p123_p3 = scmp.ne.s32.totalorder %s563_s13, %s559_s12 }
   0x8   : > { %s749_s20 = smov (%p30_p0, %s28_s20), 0  ;;  %p124_p5 = scmp.eq.s32.totalorder %s415_s19, 1 }
   0x9   : > { %p644_p4 = por %p118_p2, %p117_p1  ;;  %s102_s23 = ssub.s32 %s575_s16, %s749_s20 }
   0xa   : > { %p418_p6 = scmp.ge.s32.totalorder %s579_s17, 1  ;;  %p105_p7 = scmp.eq.s32.totalorder %s102_s23, 0 }
   0xb   : > { %p651_p8 = por %p124_p5, %p123_p3  ;;  %p161_p9 = scmp.lt.s32.totalorder %s579_s17, 3 }
   0xc   : > { %s657_s25 = scalar_select %p105_p7, %s567_s14, %s107_s21  }
   0xd   : > { %p162_p10 = pnand %p418_p6, %p161_p9 }
   0xe   : > { %p190_p11 = scmp.lt.s32.totalorder (!%p162_p10), %s571_s15, 1  ;;  %s186_s30 = sand.u32 (!%p162_p10), 1, %s563_s13  }
   0xf   : > { %165 = sbr.rel (%p162_p10) target bundleno = 182 (0xb6), region = 32  ;;  %s438_s6 = sshll.u32 (!%p162_p10), %s571_s15, 6 }
  0x10   : > { %s331_s9 = scalar_lea.hbm (!%p162_p10), %s740_s3, %s438_s6  ;;  %s318_s11 = scalar_lea.sflag (!%p162_p10), [#allocation3], %s186_s30 }
  0x11   : > { %s521_s26 = scalar_lea.hbm (!%p162_p10), %s740_s3, 128 }
  0x14   : > { %v581_v0 = vmov 0   ;;  %v206_v1 = vld [vmem:[%s738_s1 + $0x10] sm:$0xff]  ;;  %s191_s28 = scalar_select %p190_p11, %s571_s15, 1  ;;  %v204_v2 = vld [vmem:[%s738_s1] sm:$0xff]  ;;  %v207_v4 = vld [vmem:[%s738_s1 + $0x18] sm:$0xff]  ;;  %vm246_vm0 = vcmask 1043456  }
  0x15   : > { %500 = vset.pattern.permute.xlu1 %v581_v0  ;;  %499 = vset.pattern.permute.xlu0 %v581_v0  ;;  %v205_v5 = vld [vmem:[%s738_s1 + $0x8] sm:$0xff]  ;;  %v200_v6 = vld [vmem:[%s737_s0] sm:$0xff]  ;;  %vm233_vm1 = vcmask 31744   ;;  %v202_v7 = vld [vmem:[%s737_s0 + $0x10] sm:$0xff]  ;;  %s334_s15 = sshll.u32 %s331_s9, 4  ;;  %s335_s15 = int_to_ptr.hbm [resolvable:$true] %s334_s15 }
  0x16   : > { %221 = vperm.xlu1 %500, %v206_v1   ;;  %211 = vperm.xlu0 %499, %v204_v2   ;;  %s437_s4 = sshll.u32 %s191_s28, 3  ;;  %v201_v10 = vld [vmem:[%s737_s0 + $0x8] sm:$0xff]  ;;  %v203_v11 = vld [vmem:[%s737_s0 + $0x18] sm:$0xff]  ;;  %s515_s18 = sshra.s32 %s335_s15, 4  ;;  %s516_s18 = int_to_ptr.hbm [resolvable:$true] %s515_s18 }
  0x17   : > { %s197_s7 = scalar_lea.vmem %s739_s2, %s437_s4  ;;  %s419_s4 = sshll.u32 %s186_s30, 6 }
  0x18   : > { %v208_v3 = vld [vmem:[%s197_s7] sm:$0xff]  ;;  %s188_s5 = scalar_lea.vmem [#allocation2], %s419_s4  ;;  %s517_s19 = scalar_lea.hbm %s516_s18, 64 }
  0x19   : > { %230 = vst [vmem:[#allocation1] ss:$2 sm:$0xff] %v208_v3  ;;  %s332_s10 = sshll.u32 %s188_s5, 4  ;;  %p518_p12 = scmp.ne.s32.totalorder %s516_s18, %s517_s19  ;;  %s333_s10 = int_to_ptr.vmem [resolvable:$true] %s332_s10 }
  0x1a   : > { %p522_p1 = scmp.lt.s32.totalorder %s516_s18, %s740_s3  ;;  %p523_p2 = scmp.lt.s32.totalorder %s521_s26, %s517_s19 }
  0x1b   : > { %p519_p13 = pnand %p518_p12, %p644_p4 }
  0x1c   : > { %p524_p3 = por %p523_p2, %p522_p1 }
  0x1d   : > { %p520_p0 = pneg %p519_p13 }
  0x1e   : > { %226 = vperm.xlu1 %500, %v207_v4   ;;  %216 = vperm.xlu0 %499, %v205_v5  }
  0x1f   : > { %p525_p5 = pnand %p524_p3, %p520_p0 }
  0x20   : > { %v231_v8 = vld.sshfl [vmem:[#allocation1] sm:$0xff pattern:$0x75316420]  ;;  %v232_v9 = vld.sshfl [vmem:[#allocation1 + $0x8] sm:$0xff pattern:$0x75316420] }
  0x21   : > { %422 = vmatpush.msk.msra.mxu0 %vm246_vm0, %v231_v8  ;;  %439 = vmatpush.msk.msra.mxu2 %vm246_vm0, %v231_v8 }
  0x22   : > { %427 = vmatpush.msk.msra.mxu1 %vm246_vm0, %v232_v9  ;;  %440 = vmatpush.msk.msra.mxu3 %vm246_vm0, %v232_v9 }
  0x23   : > { %423 = vmatmul.msk.f32.vlgmr.msra.gmra.mxu0 %vm233_vm1, %v200_v6  ;;  %425 = vmatmul.msk.f32.vlgmr.msra.gmra.mxu2 %vm233_vm1, %v202_v7 }
  0x24   : > { %428 = vmatmul.msk.f32.vlgmr.msra.gmra.mxu1 %vm233_vm1, %v200_v6  ;;  %430 = vmatmul.msk.f32.vlgmr.msra.gmra.mxu3 %vm233_vm1, %v202_v7 }
  0x2b   : > { %424 = vmatmul.msk.f32.gmra.mxu0 %vm233_vm1, %v201_v10  ;;  %426 = vmatmul.msk.f32.gmra.mxu2 %vm233_vm1, %v203_v11 }
  0x2c   : > { %429 = vmatmul.msk.f32.gmra.mxu1 %vm233_vm1, %v201_v10  ;;  %431 = vmatmul.msk.f32.gmra.mxu3 %vm233_vm1, %v203_v11 }
  0x88   : > { %v212_v12 = vpop.permute.xlu0 %211  ;;  %v222_v17 = vpop.permute.xlu1 %221 }
  0x90   : > { %v217_v21 = vpop.permute.xlu0 %216  ;;  %v227_v27 = vpop.permute.xlu1 %226 }
  0xa0   : > { %v268_v13 = vpop.f32.mrf.mxu0 }
  0xa1   : > { %v269_v14 = vadd.f32 %v268_v13, %v212_v12  ;;  %v297_v15 = vpop.f32.mrf.mxu1 }
  0xa2   : > { %v298_v16 = vadd.f32 %v297_v15, %v212_v12 }
  0xa3   : > { %309 = vst [vmem:[%s188_s5] sm:$0xff] %v269_v14 }
  0xa4   : > { %310 = vst [vmem:[%s188_s5 + $0x8] sm:$0xff] %v298_v16 }
  0xa6   : > { %v274_v18 = vpop.f32.mrf.mxu2 }
  0xa7   : > { %v275_v19 = vadd.f32 %v274_v18, %v222_v17  ;;  %v303_v20 = vpop.f32.mrf.mxu3 }
  0xa8   : > { %v304_v22 = vadd.f32 %v303_v20, %v222_v17  ;;  %v271_v23 = vpop.f32.mrf.mxu0 }
  0xa9   : > { %313 = vst [vmem:[%s188_s5 + $0x20] sm:$0xff] %v275_v19  ;;  %v272_v24 = vadd.f32 %v271_v23, %v217_v21  ;;  %v300_v25 = vpop.f32.mrf.mxu1 }
  0xaa   : > { %314 = vst [vmem:[%s188_s5 + $0x28] sm:$0xff] %v304_v22  ;;  %v301_v26 = vadd.f32 %v300_v25, %v217_v21 }
  0xab   : > { %311 = vst [vmem:[%s188_s5 + $0x10] sm:$0xff] %v272_v24 }
  0xac   : > { %312 = vst [vmem:[%s188_s5 + $0x18] sm:$0xff] %v301_v26 }
  0xae   : > { %v277_v28 = vpop.f32.mrf.mxu2 }
  0xaf   : > { %v278_v29 = vadd.f32 %v277_v28, %v227_v27  ;;  %v306_v30 = vpop.f32.mrf.mxu3 }
  0xb0   : > { %v307_v31 = vadd.f32 %v306_v30, %v227_v27 }
  0xb1   : > { %315 = vst [vmem:[%s188_s5 + $0x30] sm:$0xff] %v278_v29 }
  0xb2   : > { %316 = vst [vmem:[%s188_s5 + $0x38] sm:$0xff] %v307_v31 }
  0xb3   : > { %528 = shalt.err (!%p525_p5)
}
  0xb4   : > { %s582_s29 = smov 256   ;;  %s583_s30 = smov 16  }
  0xb5   : > { %441 = dma.vmem_to_hbm [thread:$0]  (%p644_p4), %s333_s10, 1024, %s335_s15, %s318_s11, %s582_s29, %s582_s29, %s583_s30  }
  0xb6 PF: > { %p447_p6 = scmp.ge.s32.totalorder %s579_s17, 2  ;;  %s349_s4 = sand.u32 1, %s559_s12  }
  0xb7   : > { %s350_s5 = scalar_lea.sflag [#allocation3], %s349_s4 }
  0xb8   : > { %p444_p7 = pnand %p447_p6, %p651_p8 }
  0xba   : > { %p445_p9 = pneg %p444_p7 }
  0xbc   : > { %554 = dma.done.wait (%p445_p9), %s350_s5, 1024  }
  0xbd   : > { %556 = vsyncadd (%p445_p9), %s350_s5, 4294966272  ;;  %s16_s17 = sadd.s32 1, %s579_s17   ;;  %s743_s12 = smov %s563_s13 }
  0xbe   : > { %p13_p10 = scmp.ge.s32.totalorder %s16_s17, 4   ;;  %s744_s13 = smov %s567_s14 }
  0xbf   : > { %s745_s14 = smov %s657_s25  ;;  %s746_s15 = smov %s575_s16 }
  0xc0   : > { %s747_s16 = smov %s749_s20  ;;  %15 = sbr.rel (!%p13_p10) target bundleno = 4 (0x4), region = 67 }
  0xc5   :  { %356 = vsyncpa [#allocation3], 1 }
  0xc6   :  { %358 = vsyncpa [#allocation3 + $0x1], 1 }

</bundles_post_ra>
